<compile_context>
chip_gen: v7x
topology: tpu7x:2x2x1
jax: 0.10.0
libtpu: 0.0.40
codegen_flags: <defaults>
</compile_context>

<pallas_src>
import numpy as np
import jax
import jax.numpy as jnp
from jax.experimental import pallas as pl
from jax.experimental.pallas import tpu as pltpu


# ----------------------------------------------------------------------------
# Fused kernel: out[b, t-tile] = tokens[b, t-tile] @ Wa + (cls[b] @ Wb + bias)
# ----------------------------------------------------------------------------
def _project_readout_kernel(tok_ref, cls_ref, w_ref, b_ref, o_ref):
    F = w_ref.shape[1]
    wa = w_ref[:F, :]          # (F, F)  token half of W^T   (static, tile-aligned)
    wb = w_ref[F:, :]          # (F, F)  readout half of W^T

    # CLS ("readout") contribution + bias: computed once per tile, broadcast-added.
    cls_term = jnp.dot(cls_ref[0], wb,
                       preferred_element_type=jnp.float32) + b_ref[...]   # (1, F)

    y = jnp.dot(tok_ref[0], wa,
                preferred_element_type=jnp.float32) + cls_term            # (Tt, F)
    o_ref[0] = y.astype(o_ref.dtype)


def project_readout(x, weight, bias, start_index=1, max_token_tile=512):
    """x: (B, N, F) tokens (token 0 = CLS).
    weight: (F, 2F) torch Linear weight (out_features, in_features).
    bias:   (F,).
    Returns (B, N - start_index, F)."""
    B, N, F = x.shape
    T = N - start_index

    # Wrapper-side (XLA, runs once) plumbing so in-kernel accesses are tile-aligned.
    tokens = x[:, start_index:, :]                # (B, T, F)
    cls_tok = x[:, 0:1, :]                        # (B, 1, F)
    w_t = jnp.transpose(weight)                   # (2F, F): in -> out, rows 0..F-1 = tokens
    b2 = bias.reshape(1, F)

    # Token tiling against VMEM; full-T block when small (full-dim blocks are
    # always legal regardless of the (8,128) divisibility rule).
    tile_t = T if T <= max_token_tile else max_token_tile
    grid = (B, pl.cdiv(T, tile_t))

    return pl.pallas_call(
        _project_readout_kernel,
        out_shape=jax.ShapeDtypeStruct((B, T, F), x.dtype),
        grid=grid,
        in_specs=[
            pl.BlockSpec((1, tile_t, F), lambda b, t: (b, t, 0)),  # token tile
            pl.BlockSpec((1, 1, F), lambda b, t: (b, 0, 0)),       # CLS token (per batch)
            pl.BlockSpec((2 * F, F), lambda b, t: (0, 0)),         # W^T (resident)
            pl.BlockSpec((1, F), lambda b, t: (0, 0)),             # bias (resident)
        ],
        out_specs=pl.BlockSpec((1, tile_t, F), lambda b, t: (b, t, 0)),
        compiler_params=pltpu.CompilerParams(
            dimension_semantics=("parallel", "parallel")),
    )(tokens, cls_tok, w_t, b2)


# ----------------------------------------------------------------------------
# Pure-JAX reference (mirrors the PyTorch forward exactly) for validation.
# ----------------------------------------------------------------------------
def _project_readout_ref(x, weight, bias, start_index=1):
    toks = x[:, start_index:, :]
    readout = jnp.broadcast_to(x[:, 0:1, :], toks.shape)
    features = jnp.concatenate([toks, readout], axis=-1)             # (B, T, 2F)
    return jnp.einsum("btf,of->bto", features, weight) + bias.reshape(1, 1, -1)


# ----------------------------------------------------------------------------
if __name__ == "__main__":
    # Small but lane-dense shapes: 1 CLS token + 8 patch tokens, in_features=128.
    B, N, F = 2, 9, 128

    key = jax.random.PRNGKey(0)
    k1, k2, k3 = jax.random.split(key, 3)
    x = jax.random.normal(k1, (B, N, F), jnp.float32)
    # torch Linear(2F, F): weight (out_features, in_features) = (F, 2F), bias (F,)
    weight = 0.05 * jax.random.normal(k2, (F, 2 * F), jnp.float32)
    bias = 0.05 * jax.random.normal(k3, (F,), jnp.float32)

    out = project_readout(x, weight, bias, start_index=1)
    out = jax.block_until_ready(out)

    ref = _project_readout_ref(x, weight, bias, start_index=1)
    assert out.shape == (B, N - 1, F), out.shape
    np.testing.assert_allclose(np.asarray(out), np.asarray(ref),
                               rtol=1e-4, atol=1e-4)
    print("KERNEL_OK")
</pallas_src>

<mosaic_0001>
module attributes {stable_mosaic.version = 11 : i64} {
  func.func @_project_readout_kernel(%arg0: i32, %arg1: i32, %arg2: memref<1x8x128xf32, #tpu.memory_space<vmem>>, %arg3: memref<1x1x128xf32, #tpu.memory_space<vmem>>, %arg4: memref<256x128xf32, #tpu.memory_space<vmem>>, %arg5: memref<1x128xf32, #tpu.memory_space<vmem>>, %arg6: memref<1x8x128xf32, #tpu.memory_space<vmem>>) attributes {dimension_semantics = [#tpu.dimension_semantics<parallel>, #tpu.dimension_semantics<parallel>], iteration_bounds = array<i64: 2, 1>, scalar_prefetch = 0 : i64, scratch_operands = 0 : i64, tpu.core_type = #tpu.core_type<tc>, window_params = [{transform_indices = @transform_0, window_bounds = array<i64: 1, 8, 128>}, {transform_indices = @transform_1, window_bounds = array<i64: 1, 1, 128>}, {pipeline_mode = #tpu.pipeline_mode<synchronous>, transform_indices = @transform_2, window_bounds = array<i64: 256, 128>}, {pipeline_mode = #tpu.pipeline_mode<synchronous>, transform_indices = @transform_3, window_bounds = array<i64: 1, 128>}, {transform_indices = @transform_4, window_bounds = array<i64: 1, 8, 128>}]} {
    %c0 = arith.constant 0 : index
    %c0_0 = arith.constant 0 : index
    %0 = vector.load %arg4[%c0, %c0_0] : memref<256x128xf32, #tpu.memory_space<vmem>>, vector<128x128xf32>
    %c128 = arith.constant 128 : index
    %c0_1 = arith.constant 0 : index
    %1 = vector.load %arg4[%c128, %c0_1] : memref<256x128xf32, #tpu.memory_space<vmem>>, vector<128x128xf32>
    %c0_2 = arith.constant 0 : index
    %c0_3 = arith.constant 0 : index
    %c0_4 = arith.constant 0 : index
    %2 = vector.load %arg3[%c0_2, %c0_3, %c0_4] : memref<1x1x128xf32, #tpu.memory_space<vmem>>, vector<1x1x128xf32>
    %3 = vector.shape_cast %2 : vector<1x1x128xf32> to vector<1x128xf32>
    %cst = arith.constant dense<0.000000e+00> : vector<1x128xf32>
    %4 = tpu.matmul %3, %1, %cst {dimension_numbers = #tpu.dot_dimension_numbers<[1], [0], [0], [1], [0, 0, 1, 1], [], []>} : vector<1x128xf32>, vector<128x128xf32>, vector<1x128xf32> -> vector<1x128xf32>
    %c0_5 = arith.constant 0 : index
    %c0_6 = arith.constant 0 : index
    %5 = vector.load %arg5[%c0_5, %c0_6] : memref<1x128xf32, #tpu.memory_space<vmem>>, vector<1x128xf32>
    %6 = arith.addf %4, %5 : vector<1x128xf32>
    %c0_7 = arith.constant 0 : index
    %c0_8 = arith.constant 0 : index
    %c0_9 = arith.constant 0 : index
    %7 = vector.load %arg2[%c0_7, %c0_8, %c0_9] : memref<1x8x128xf32, #tpu.memory_space<vmem>>, vector<1x8x128xf32>
    %8 = vector.shape_cast %7 : vector<1x8x128xf32> to vector<8x128xf32>
    %cst_10 = arith.constant dense<0.000000e+00> : vector<8x128xf32>
    %9 = tpu.matmul %8, %0, %cst_10 {dimension_numbers = #tpu.dot_dimension_numbers<[1], [0], [0], [1], [0, 0, 1, 1], [], []>} : vector<8x128xf32>, vector<128x128xf32>, vector<8x128xf32> -> vector<8x128xf32>
    %10 = vector.broadcast %6 : vector<1x128xf32> to vector<8x128xf32>
    %11 = arith.addf %9, %10 : vector<8x128xf32>
    %c0_11 = arith.constant 0 : index
    %c0_12 = arith.constant 0 : index
    %c0_13 = arith.constant 0 : index
    %12 = vector.load %arg6[%c0_11, %c0_12, %c0_13] : memref<1x8x128xf32, #tpu.memory_space<vmem>>, vector<1x8x128xf32>
    %13 = vector.shape_cast %12 : vector<1x8x128xf32> to vector<8x128xf32>
    %14 = vector.shape_cast %11 : vector<8x128xf32> to vector<1x8x128xf32>
    tpu.vector_store %arg6[%c0_11, %c0_12, %c0_13], %14 {strides = array<i32>} : memref<1x8x128xf32, #tpu.memory_space<vmem>>, vector<1x8x128xf32>,
    return
  }
  func.func @transform_0(%arg0: i32, %arg1: i32) -> (i32, i32, i32) {
    %c0_i32 = arith.constant 0 : i32
    %c0_i32_0 = arith.constant 0 : i32
    return %arg0, %arg1, %c0_i32 : i32, i32, i32
  }
  func.func @transform_1(%arg0: i32, %arg1: i32) -> (i32, i32, i32) {
    %c0_i32 = arith.constant 0 : i32
    %c0_i32_0 = arith.constant 0 : i32
    %c0_i32_1 = arith.constant 0 : i32
    return %arg0, %c0_i32, %c0_i32_0 : i32, i32, i32
  }
  func.func @transform_2(%arg0: i32, %arg1: i32) -> (i32, i32) {
    %c0_i32 = arith.constant 0 : i32
    %c0_i32_0 = arith.constant 0 : i32
    %c0_i32_1 = arith.constant 0 : i32
    return %c0_i32, %c0_i32_0 : i32, i32
  }
  func.func @transform_3(%arg0: i32, %arg1: i32) -> (i32, i32) {
    %c0_i32 = arith.constant 0 : i32
    %c0_i32_0 = arith.constant 0 : i32
    %c0_i32_1 = arith.constant 0 : i32
    return %c0_i32, %c0_i32_0 : i32, i32
  }
  func.func @transform_4(%arg0: i32, %arg1: i32) -> (i32, i32, i32) {
    %c0_i32 = arith.constant 0 : i32
    %c0_i32_0 = arith.constant 0 : i32
    return %arg0, %arg1, %c0_i32 : i32, i32, i32
  }
}

</mosaic_0001>

<bundles_post_ra>
// kernel: tpu_custom_call.1
= control target key start
LH: loop header
LB: loop body
LE: loop exit
PB: predicated region body
PF: predicated region fallthrough
CT: control target
= control target key end

     0   :  { %9 = vsyncpa [#allocation3], 0  ;;  %s1222_s0 = inlined_call_operand.hbm [shape: f32[2,8,128], index: 0, kind: input, shape index: {}]   ;;  %s1223_s1 = inlined_call_operand.vmem [shape: f32[2,1,128], index: 1, kind: input, shape index: {}]   ;;  %s1224_s2 = inlined_call_operand.hbm [shape: f32[256,128], index: 2, kind: input, shape index: {}]   ;;  %s1225_s3 = inlined_call_operand.vmem [shape: f32[1,128], index: 3, kind: input, shape index: {}]   ;;  %s1226_s4 = inlined_call_operand.hbm [shape: f32[2,8,128], index: 4, kind: output, shape index: {}]  }
   0x1   :  { %11 = vsyncpa [#allocation3 + $0x1], 0 }
   0x2   :  { %12 = vsyncpa [#allocation6], 0 }
   0x3   :  { %13 = vsyncpa [#allocation4], 0 }
   0x4   :  { %15 = vsyncpa [#allocation4 + $0x1], 0  ;;  %s977_s15 = smov 0   ;;  %s979_s16 = smov 0  }
   0x5   :  { %s981_s17 = smov 0   ;;  %s983_s18 = smov 0  }
   0x6   :  { %s985_s19 = smov 0   ;;  %s987_s20 = smov 0  }
   0x7 LB: > { %s553_s21 = sadd.s32 4294967295, %s942_s20   ;;  %s554_s22 = sadd.s32 4294967294, %s942_s20   ;;  %s942_s20 = sphi %s987_s20, %s21_s20   ;;  %s938_s19 = sphi %s985_s19, %s1250_s19   ;;  %s934_s18 = sphi %s983_s18, %s1249_s18   ;;  %s930_s17 = sphi %s981_s17, %s1248_s17   ;;  %s926_s16 = sphi %s979_s16, %s1247_s16   ;;  %s922_s15 = sphi %s977_s15, %s1246_s15  }
   0x8   : > { %p55_p0 = scmp.ne.s32.totalorder %s926_s16, %s922_s15  ;;  %p1011_p1 = scmp.eq.s32.totalorder %s553_s21, 0 }
   0x9   : > { %p1015_p2 = scmp.eq.s32.totalorder %s553_s21, 1  ;;  %p155_p3 = scmp.eq.s32.totalorder %s554_s22, 1 }
   0xa   : > { %s1231_s23 = scalar_select %p1011_p1, 1, 0 }
   0xb   : > { %s1232_s24 = scalar_select %p1015_p2, 1, 0 }
   0xc   : > { %p1021_p4 = por %p1011_p1, %p55_p0  ;;  %p555_p5 = scmp.ge.s32.totalorder %s942_s20, 1 }
   0xd   : > { %p1026_p6 = por %p155_p3, %p55_p0  ;;  %p162_p7 = scmp.lt.s32.totalorder %s942_s20, 3 }
   0xe   : > { %s1233_s25 = scalar_select %p1021_p4, 1, 0 }
   0xf   : > { %s1234_s26 = scalar_select %p1026_p6, 1, 0 }
  0x10   : > { %p1031_p8 = pnand %p555_p5, %p162_p7  ;;  %s944_s28 = smov [#allocation5]  }
  0x11   : > { %s174_s29 = sshll.u32 %s944_s28, 4  ;;  %s33_s5 = sadd.s32 1, %s938_s19  ;;  %s175_s29 = int_to_ptr.vmem [resolvable:$true] %s174_s29 }
  0x12   : > { %s1235_s27 = scalar_select %p1031_p8, 1, 0 }
  0x13   : > { %p728_p9 = pneg %p1031_p8  ;;  %s798_s8 = scalar_lea.hbm %s1224_s2, 4096 }
  0x14   : > { %p799_p12 = scmp.ne.s32.totalorder %s1224_s2, %s798_s8  ;;  %p805_p5 = scmp.lt.u32.totalorder %s798_s8, %s1224_s2 }
  0x15   : > { %p1040_p11 = pnand %p728_p9, %p1011_p1 }
  0x17   : > { %p800_p13 = pneg %p1040_p11 }
  0x19   : > { %p801_p0 = pnand %p800_p13, %p799_p12 }
  0x1b   : > { %p802_p3 = pneg %p801_p0 }
  0x1d   : > { %p807_p7 = pnand %p805_p5, %p802_p3 }
  0x1f   : > { %810 = shalt.err (!%p807_p7)
}
  0x20   : > { %s811_s13 = scalar_lea.vmem %s175_s29, 4096  ;;  %p819_p1 = scmp.lt.s32.totalorder %s175_s29, %s175_s29 }
  0x21   : > { %p812_p9 = scmp.ne.s32.totalorder %s175_s29, %s811_s13  ;;  %p820_p4 = scmp.lt.s32.totalorder %s811_s13, %s811_s13 }
  0x23   : > { %p814_p10 = pnand %p812_p9, %p800_p13  ;;  %p821_p8 = por %p820_p4, %p819_p1 }
  0x25   : > { %p815_p6 = pneg %p814_p10 }
  0x27   : > { %p822_p2 = pnand %p821_p8, %p815_p6 }
  0x29   : > { %825 = shalt.err (!%p822_p2)
}
  0x2a   : > { %s945_s14 = smov 128   ;;  %s946_s21 = smov 8  }
  0x2b   : > { %731 = dma.hbm_to_vmem [thread:$0]  (!%p1040_p11), %s1224_s2, 4096, %s175_s29, [#allocation6], %s945_s14, %s945_s14, %s946_s21  }
  0x2c   : > { %p35_p1 = scmp.ge.s32.totalorder %s33_s5, 2  ;;  %s42_s6 = sadd.s32 1, %s930_s17 }
  0x2d   : > { %p49_p2 = scmp.ne.s32.totalorder %s930_s17, %s926_s16  ;;  %p50_p4 = scmp.eq.s32.totalorder %s942_s20, 0 }
  0x2e   : > { %s1252_s5 = smov (%p35_p1, %s33_s5), 0  ;;  %p1238_p8 = scmp.ne.s32.totalorder %s1232_s24, 0 }
  0x2f   : > { %p1067_p6 = por %p50_p4, %p49_p2  ;;  %s37_s30 = ssub.s32 %s938_s19, %s1252_s5 }
  0x30   : > { %p1073_p10 = por %p1238_p8, %p49_p2  ;;  %p741_p12 = scmp.lt.s32.totalorder %s942_s20, 2 }
  0x31   : > { %p40_p11 = scmp.eq.s32.totalorder %s37_s30, 0  ;;  %s191_s29 = sand.u32 1, %s930_s17  }
  0x32   : > { %s558_s9 = sshll.u32 %s191_s29, 3  ;;  %s559_s11 = sshll.u32 %s938_s19, 7 }
  0x33   : > { %s1082_s10 = scalar_select %p40_p11, %s930_s17, %s42_s6  }
  0x34   : > { %s1088_s14 = scalar_lea.hbm %s1222_s0, %s559_s11  ;;  %s195_s24 = scalar_lea.vmem [#allocation2], %s558_s9 }
  0x35   : > { %s203_s21 = sshll.u32 %s195_s24, 4  ;;  %p1094_p13 = pnand %p741_p12, %p1067_p6  ;;  %s1090_s21 = int_to_ptr.vmem [resolvable:$true] %s203_s21 }
  0x36   : > { %s192_s28 = scalar_lea.sflag [#allocation3], %s191_s29  ;;  %s826_s6 = scalar_lea.hbm %s1088_s14, 128 }
  0x37   : > { %p827_p0 = scmp.ne.s32.totalorder %s1088_s14, %s826_s6  ;;  %p828_p3 = pneg %p1094_p13 }
  0x38   : > { %s831_s11 = scalar_lea.hbm %s1222_s0, 256  ;;  %p832_p9 = scmp.lt.u32.totalorder %s1088_s14, %s1222_s0 }
  0x39   : > { %p829_p5 = pnand %p828_p3, %p827_p0  ;;  %p833_p1 = scmp.lt.u32.totalorder %s831_s11, %s826_s6 }
  0x3a   : > { %p835_p4 = scmp.lt.u32.totalorder %s826_s6, %s1088_s14 }
  0x3b   : > { %p830_p7 = pneg %p829_p5  ;;  %p834_p2 = por %p833_p1, %p832_p9 }
  0x3d   : > { %p836_p6 = por %p835_p4, %p834_p2 }
  0x3f   : > { %p837_p8 = pnand %p836_p6, %p830_p7 }
  0x41   : > { %840 = shalt.err (!%p837_p8)
}
  0x42   : > { %s841_s29 = scalar_lea.vmem %s1090_s21, 128  ;;  %s947_s13 = smov [#allocation2]  }
  0x43   : > { %p842_p12 = scmp.ne.s32.totalorder %s1090_s21, %s841_s29  ;;  %s846_s24 = sshll.u32 %s947_s13, 4  ;;  %s847_s24 = int_to_ptr.vmem [resolvable:$false] %s846_s24 }
  0x44   : > { %s848_s30 = scalar_lea.vmem %s847_s24, 256  ;;  %p849_p5 = scmp.lt.s32.totalorder %s1090_s21, %s847_s24 }
  0x45   : > { %p844_p11 = pnand %p842_p12, %p828_p3  ;;  %p850_p9 = scmp.lt.s32.totalorder %s848_s30, %s841_s29 }
  0x47   : > { %p845_p0 = pneg %p844_p11  ;;  %p851_p1 = por %p850_p9, %p849_p5 }
  0x49   : > { %p852_p2 = pnand %p851_p1, %p845_p0 }
  0x4b   : > { %855 = shalt.err (!%p852_p2)
}
  0x4c   : > { %735 = dma.hbm_to_vmem [thread:$0]  (!%p1094_p13), %s1088_s14, 128, %s1090_s21, %s192_s28  }
  0x4d   : > { %p1241_p7 = scmp.ne.s32.totalorder %s1235_s27, 0 }
  0x4e   : > { %s1126_s6 = sand.u32 (!%p1241_p7), 1, %s926_s16   ;;  %p1242_p3 = scmp.ne.s32.totalorder (!%p1241_p7), %s1233_s25, 0 }
  0x4f   : > { %218 = sbr.rel (%p1241_p7) target bundleno = 357 (0x165), region = 36  ;;  %s561_s9 = sshll.u32 (!%p1241_p7), %s1126_s6, 3 }
  0x50   : > { %s221_s11 = scalar_lea.sflag (!%p1241_p7), [#allocation3], %s1126_s6  ;;  %s1132_s7 = scalar_lea.vmem (!%p1241_p7), [#allocation2], %s561_s9 }
  0x56   : > { %909 = dma.done.wait (%p1242_p3), %s221_s11, 128  }
  0x57   : > { %911 = vsyncadd (%p1242_p3), %s221_s11, 4294967168  ;;  %p1243_p13 = scmp.ne.s32.totalorder %s1231_s23, 0 }
  0x59   : > { %913 = dma.done.wait (%p1243_p13), [#allocation6], 4096  }
  0x5a   : > { %915 = vsyncadd (%p1243_p13), [#allocation6], 4294963200  ;;  %v948_v0 = vmov 0.0|0.0   ;;  %vm949_vm0 = vmmov 0   ;;  %v950_v1 = vmov 0.0   ;;  %v275_v2 = vld [vmem:[#allocation5 + $0x80] sm:$0xff]  ;;  %v364_v52 = vlaneseq }
  0x5b   : > { %672 = vmatprep.subr.bf16.mxu0 %v948_v0  ;;  %696 = vmatprep.subr.bf16.mxu1 %v948_v0  ;;  %v276_v3 = vld [vmem:[#allocation5 + $0x88] sm:$0xff]  ;;  %v259_v4 = vld [vmem:[#allocation5] sm:$0xff]  ;;  %v277_v7 = vld [vmem:[#allocation5 + $0x90] sm:$0xff]  ;;  %p256_p4 = scmp.lt.s32.totalorder %s934_s18, 1  ;;  %s565_s28 = sshll.u32 %s934_s18, 7 }
  0x5c   : > { %634 = vmatprep.mubr.msk.f32.mxu0 %vm949_vm0, %v950_v1  ;;  %669 = vmatprep.mubr.msk.f32.mxu1 %vm949_vm0, %v950_v1  ;;  %v673_v5 = vpack.c.bf16 %v276_v3, %v275_v2  ;;  %v260_v6 = vld [vmem:[#allocation5 + $0x8] sm:$0xff]  ;;  %v278_v8 = vld [vmem:[#allocation5 + $0x98] sm:$0xff]  ;;  %v261_v10 = vld [vmem:[#allocation5 + $0x10] sm:$0xff]  ;;  %v365_v53 = vshrl.u32 %v364_v52, 7  ;;  %s255_s12 = scalar_lea.vmem [#allocation7], %s561_s9  ;;  %s1173_s30 = scalar_lea.hbm %s1226_s4, %s565_s28 }
  0x5d   : > { %v697_v9 = vpack.c.bf16 %v260_v6, %v259_v4  ;;  %v262_v11 = vld [vmem:[#allocation5 + $0x18] sm:$0xff]  ;;  %v676_v12 = vpack.c.bf16 %v278_v8, %v277_v7  ;;  %v279_v14 = vld [vmem:[#allocation5 + $0xa0] sm:$0xff]  ;;  %v280_v15 = vld [vmem:[#allocation5 + $0xa8] sm:$0xff]  ;;  %s257_s23 = scalar_select %p256_p4, %s934_s18, 1 }
  0x5e   : > { %674 = vmatpush3.bf16.msra.mxu0 %v673_v5  ;;  %v700_v13 = vpack.c.bf16 %v262_v11, %v261_v10  ;;  %v263_v16 = vld [vmem:[#allocation5 + $0x20] sm:$0xff]  ;;  %v264_v17 = vld [vmem:[#allocation5 + $0x28] sm:$0xff]  ;;  %v679_v18 = vpack.c.bf16 %v280_v15, %v279_v14  ;;  %v281_v20 = vld [vmem:[#allocation5 + $0xb0] sm:$0xff]  ;;  %v366_v55 = vsub.s32 0, %v365_v53  ;;  %s454_s29 = sshll.u32 %s255_s12, 4  ;;  %s440_s11 = scalar_lea.sflag [#allocation4], %s1126_s6  ;;  %s1175_s29 = int_to_ptr.vmem [resolvable:$true] %s454_s29 }
  0x5f   : > { %675 = vmatprep.subr.bf16.mxu0 %v948_v0  ;;  %698 = vmatpush3.bf16.msra.mxu1 %v697_v9  ;;  %v703_v19 = vpack.c.bf16 %v264_v17, %v263_v16  ;;  %v282_v21 = vld [vmem:[#allocation5 + $0xb8] sm:$0xff]  ;;  %v265_v22 = vld [vmem:[#allocation5 + $0x30] sm:$0xff]  ;;  %v283_v26 = vld [vmem:[#allocation5 + $0xc0] sm:$0xff]  ;;  %s258_s14 = scalar_lea.vmem %s1223_s1, %s257_s23  ;;  %s951_s18 = smov [#allocation7]  }
  0x60   : > { %699 = vmatprep.subr.bf16.mxu1 %v948_v0  ;;  %v266_v23 = vld [vmem:[#allocation5 + $0x38] sm:$0xff]  ;;  %v682_v24 = vpack.c.bf16 %v282_v21, %v281_v20  ;;  %v284_v27 = vld [vmem:[#allocation5 + $0xc8] sm:$0xff]  ;;  %v267_v28 = vld [vmem:[#allocation5 + $0x40] sm:$0xff]  ;;  %s860_s9 = sshll.u32 %s951_s18, 4  ;;  %s861_s9 = int_to_ptr.vmem [resolvable:$false] %s860_s9 }
  0x61   : > { %v706_v25 = vpack.c.bf16 %v266_v23, %v265_v22  ;;  %v268_v29 = vld [vmem:[#allocation5 + $0x48] sm:$0xff]  ;;  %v685_v30 = vpack.c.bf16 %v284_v27, %v283_v26  ;;  %v285_v32 = vld [vmem:[#allocation5 + $0xd0] sm:$0xff]  ;;  %v286_v33 = vld [vmem:[#allocation5 + $0xd8] sm:$0xff]  ;;  %s862_s23 = scalar_lea.vmem %s861_s9, 256  ;;  %p863_p11 = scmp.lt.s32.totalorder %s1175_s29, %s861_s9 }
  0x62   : > { %677 = vmatpush3.bf16.msra.mxu0 %v676_v12  ;;  %v709_v31 = vpack.c.bf16 %v268_v29, %v267_v28  ;;  %v269_v34 = vld [vmem:[#allocation5 + $0x50] sm:$0xff]  ;;  %v270_v35 = vld [vmem:[#allocation5 + $0x58] sm:$0xff]  ;;  %v688_v36 = vpack.c.bf16 %v286_v33, %v285_v32  ;;  %v287_v38 = vld [vmem:[#allocation5 + $0xe0] sm:$0xff] }
  0x63   : > { %678 = vmatprep.subr.bf16.mxu0 %v948_v0  ;;  %701 = vmatpush3.bf16.msra.mxu1 %v700_v13  ;;  %v712_v37 = vpack.c.bf16 %v270_v35, %v269_v34  ;;  %v288_v39 = vld [vmem:[#allocation5 + $0xe8] sm:$0xff]  ;;  %v271_v40 = vld [vmem:[#allocation5 + $0x60] sm:$0xff]  ;;  %v289_v44 = vld [vmem:[#allocation5 + $0xf0] sm:$0xff] }
  0x64   : > { %702 = vmatprep.subr.bf16.mxu1 %v948_v0  ;;  %v272_v41 = vld [vmem:[#allocation5 + $0x68] sm:$0xff]  ;;  %v691_v42 = vpack.c.bf16 %v288_v39, %v287_v38  ;;  %v290_v45 = vld [vmem:[#allocation5 + $0xf8] sm:$0xff]  ;;  %v273_v46 = vld [vmem:[#allocation5 + $0x70] sm:$0xff] }
  0x65   : > { %v715_v43 = vpack.c.bf16 %v272_v41, %v271_v40  ;;  %v274_v47 = vld [vmem:[#allocation5 + $0x78] sm:$0xff]  ;;  %v694_v48 = vpack.c.bf16 %v290_v45, %v289_v44  ;;  %v291_v50 = vld [vmem:[%s258_s14] sm:$0x1] }
  0x66   : > { %680 = vmatpush3.bf16.msra.mxu0 %v679_v18  ;;  %v718_v49 = vpack.c.bf16 %v274_v47, %v273_v46  ;;  %v363_v51 = vld [vmem:[%s1132_s7] sm:$0xff]  ;;  %s856_s7 = scalar_lea.vmem %s1175_s29, 128 }
  0x67   : > { %681 = vmatprep.subr.bf16.mxu0 %v948_v0  ;;  %704 = vmatpush3.bf16.msra.mxu1 %v703_v19  ;;  %v292_v54 = vld [vmem:[%s1225_s3] sm:$0x1]  ;;  %p857_p6 = scmp.ne.s32.totalorder %s1175_s29, %s856_s7  ;;  %p864_p0 = scmp.lt.s32.totalorder %s862_s23, %s856_s7 }
  0x68   : > { %705 = vmatprep.subr.bf16.mxu1 %v948_v0 }
  0x69   : > { %p858_p8 = pnand %p857_p6, %p1073_p10  ;;  %p865_p5 = por %p864_p0, %p863_p11 }
  0x6a   : > { %683 = vmatpush3.bf16.msra.mxu0 %v682_v24 }
  0x6b   : > { %684 = vmatprep.subr.bf16.mxu0 %v948_v0  ;;  %707 = vmatpush3.bf16.msra.mxu1 %v706_v25  ;;  %p859_p12 = pneg %p858_p8 }
  0x6c   : > { %708 = vmatprep.subr.bf16.mxu1 %v948_v0 }
  0x6d   : > { %p866_p9 = pnand %p865_p5, %p859_p12 }
  0x6e   : > { %686 = vmatpush3.bf16.msra.mxu0 %v685_v30 }
  0x6f   : > { %687 = vmatprep.subr.bf16.mxu0 %v948_v0  ;;  %710 = vmatpush3.bf16.msra.mxu1 %v709_v31 }
  0x70   : > { %711 = vmatprep.subr.bf16.mxu1 %v948_v0 }
  0x72   : > { %689 = vmatpush3.bf16.msra.mxu0 %v688_v36 }
  0x73   : > { %690 = vmatprep.subr.bf16.mxu0 %v948_v0  ;;  %713 = vmatpush3.bf16.msra.mxu1 %v712_v37 }
  0x74   : > { %714 = vmatprep.subr.bf16.mxu1 %v948_v0 }
  0x76   : > { %692 = vmatpush3.bf16.msra.mxu0 %v691_v42 }
  0x77   : > { %693 = vmatprep.subr.bf16.mxu0 %v948_v0  ;;  %716 = vmatpush3.bf16.msra.mxu1 %v715_v43 }
  0x78   : > { %717 = vmatprep.subr.bf16.mxu1 %v948_v0 }
  0x7a   : > { %695 = vmatpush3.bf16.msra.mxu0 %v694_v48 }
  0x7b   : > { %719 = vmatpush3.bf16.msra.mxu1 %v718_v49 }
  0x7d   : > { %635 = vmatmul.mubr.f32.vlgmr.msra.gmra.mrb[0].mxu0 %v291_v50 }
  0x7e   : > { %670 = vmatmul.mubr.f32.vlgmr.msra.gmra.mrb[0].mxu1 %v363_v51 }
 0x150   : > { %v359_v56 = vpop.f32.mrb[0].mxu0 }
 0x151   : > { %v360_v57 = vadd.f32 %v359_v56, %v292_v54  ;;  %v636_v58 = vpop.f32.mrb[1].mxu0  ;;  %v434_v59 = vpop.f32.mrb[0].mxu1 }
 0x152   : > { %v671_v60 = vpop.f32.mrb[1].mxu1 }
 0x153   : > { %v367_v61 = vrot.slane %v360_v57, %v366_v55 }
 0x155   : > { %v435_v62 = vadd.f32 %v434_v59, %v367_v61 }
 0x157   : > { %438 = vst [vmem:[%s255_s12] sm:$0xff] %v435_v62 }
 0x158   : > { %869 = shalt.err (!%p866_p9)
}
 0x159   : > { %s870_s6 = scalar_lea.hbm %s1173_s30, 128  ;;  %s874_s14 = scalar_lea.hbm %s1226_s4, 256 }
 0x15a   : > { %p871_p1 = scmp.ne.s32.totalorder %s1173_s30, %s870_s6  ;;  %p875_p3 = scmp.lt.u32.totalorder %s1173_s30, %s1226_s4 }
 0x15b   : > { %p876_p13 = scmp.lt.u32.totalorder %s874_s14, %s870_s6  ;;  %p878_p6 = scmp.lt.u32.totalorder %s870_s6, %s1173_s30 }
 0x15c   : > { %p872_p2 = pnand %p871_p1, %p1073_p10 }
 0x15d   : > { %p877_p4 = por %p876_p13, %p875_p3 }
 0x15e   : > { %p873_p7 = pneg %p872_p2 }
 0x15f   : > { %p879_p8 = por %p878_p6, %p877_p4 }
 0x161   : > { %p880_p12 = pnand %p879_p8, %p873_p7 }
 0x163   : > { %883 = shalt.err (!%p880_p12)
}
 0x164   : > { %726 = dma.vmem_to_hbm [thread:$0]  (%p1073_p10), %s1175_s29, 128, %s1173_s30, %s440_s11  }
 0x165 PF: > { %s466_s28 = sand.u32 1, %s922_s15   ;;  %p1244_p11 = scmp.ne.s32.totalorder %s1234_s26, 0 }
 0x166   : > { %p1245_p0 = scmp.ge.s32.totalorder %s942_s20, 2  ;;  %s467_s12 = scalar_lea.sflag [#allocation4], %s466_s28 }
 0x168   : > { %p737_p5 = pnand %p1245_p0, %p1244_p11 }
 0x16a   : > { %917 = dma.done.wait (!%p737_p5), %s467_s12, 128  }
 0x16b   : > { %919 = vsyncadd (!%p737_p5), %s467_s12, 4294967168  ;;  %s21_s20 = sadd.s32 1, %s942_s20   ;;  %s1246_s15 = smov %s926_s16 }
 0x16c   : > { %p18_p9 = scmp.ge.s32.totalorder %s21_s20, 4   ;;  %s1247_s16 = smov %s930_s17 }
 0x16d   : > { %s1248_s17 = smov %s1082_s10  ;;  %s1249_s18 = smov %s938_s19 }
 0x16e   : > { %s1250_s19 = smov %s1252_s5  ;;  %20 = sbr.rel (!%p18_p9) target bundleno = 7 (0x7), region = 88 }
 0x175   :  { %472 = vsyncpa [#allocation3], 1 }
 0x176   :  { %474 = vsyncpa [#allocation3 + $0x1], 1 }
 0x177   :  { %475 = vsyncpa [#allocation6], 1 }
 0x178   :  { %476 = vsyncpa [#allocation4], 1 }
 0x179   :  { %478 = vsyncpa [#allocation4 + $0x1], 1 }

</bundles_post_ra>
